<compile_context>
chip_gen: v7x
topology: tpu7x:2x2x1
jax: 0.10.0
libtpu: 0.0.40
codegen_flags: <defaults>
</compile_context>

<pallas_src>
import math
import functools

import jax
import jax.numpy as jnp
from jax import lax
from jax.experimental import pallas as pl
from jax.experimental.pallas import tpu as pltpu


# ----------------------------- Pallas kernels ------------------------------

def _matmul_bn_kernel(a_ref, b_ref, o_ref, ssum_ref, ssq_ref):
    # a: (tm, K) bf16, b: (K, Np) bf16 -> o: (tm, Np) f32 (Np % 128 == 0, so
    # every output store is a full-lane vst).  The per-channel sum and
    # sum-of-squares (BatchNorm statistics) ride along as a free epilogue.
    acc = jnp.dot(a_ref[...], b_ref[...], preferred_element_type=jnp.float32)
    o_ref[...] = acc
    ssum_ref[...] = jnp.sum(acc, axis=0, keepdims=True)[None]          # (1,1,Np)
    ssq_ref[...] = jnp.sum(acc * acc, axis=0, keepdims=True)[None]     # (1,1,Np)


def _round_up(v, m):
    return -(-v // m) * m


def _pick_tm(M):
    """Row-tile size.  Single block for small/medium GEMMs (every stage GEMM
    in this net): per-grid-step overhead dwarfs the work and there is nothing
    to pipeline.  Only a large GEMM (conv1, M=1024) is split into 512-row
    blocks so v7x's two TensorCores each take one block; the extra grid step
    is near-neutral on single-TC v5e/v6e."""
    if M > 512 and M % 512 == 0:
        return 512
    return M


def matmul_bn(a, b):
    """a: (M, K), b: (K, O) -> (out (M, O) f32, ssum (O,), ssq (O,)).

    bf16 MXU operands with f32 accumulation.  K is left unpadded (the block
    covers the full K; Mosaic pads the contraction inside VMEM), only the tiny
    output-channel dim is zero-padded to a lane-dense 128."""
    M, K = a.shape
    K2, O = b.shape
    assert K == K2
    Np = _round_up(O, 128)
    a = a.astype(jnp.bfloat16)
    b = b.astype(jnp.bfloat16)
    if Np != O:
        b = jnp.pad(b, ((0, 0), (0, Np - O)))
    tm = _pick_tm(M)
    nb = M // tm

    out, ssum, ssq = pl.pallas_call(
        _matmul_bn_kernel,
        out_shape=(jax.ShapeDtypeStruct((M, Np), jnp.float32),
                   jax.ShapeDtypeStruct((nb, 1, Np), jnp.float32),
                   jax.ShapeDtypeStruct((nb, 1, Np), jnp.float32)),
        grid=(nb,),
        in_specs=[pl.BlockSpec((tm, K), lambda i: (i, 0)),
                  pl.BlockSpec((K, Np), lambda i: (0, 0))],
        out_specs=(pl.BlockSpec((tm, Np), lambda i: (i, 0)),
                   pl.BlockSpec((1, 1, Np), lambda i: (i, 0, 0)),
                   pl.BlockSpec((1, 1, Np), lambda i: (i, 0, 0))),
        compiler_params=pltpu.CompilerParams(
            dimension_semantics=("parallel",)),
    )(a, b)
    ssum = jnp.sum(ssum, axis=(0, 1))[:O]
    ssq = jnp.sum(ssq, axis=(0, 1))[:O]
    return out[:, :O], ssum, ssq


def _atten_kernel(xs_ref, xq_ref, w_ref, b_ref, o_ref, *, way, shot):
    """Fused Attention.extract + Attention.predict for one stage.

    xs: (way*shot, HW, C) support images (NHWC, spatial flattened)
    xq: (nq,       HW, C) query images
    w : (1, 1, C), b: (1, 1, 1)  -- 1x1 conv producing the spatial mask
    o : (nq, way)  per-query class probabilities for this stage
    """
    w = w_ref[...]
    b = b_ref[...]

    def extract(x):
        # 1x1 conv with one output channel == weighted channel reduction (VPU),
        # then softmax over the spatial positions of each image.
        logits = jnp.sum(x * w, axis=2, keepdims=True) + b           # (n, HW, 1)
        m = jnp.max(logits, axis=1, keepdims=True)
        e = jnp.exp(logits - m)
        mask = e * pl.reciprocal(jnp.sum(e, axis=1, keepdims=True), approx=True)
        return x * mask                                              # (n, HW, C)

    fs = extract(xs_ref[...])                                        # (way*shot, HW, C)
    fq = extract(xq_ref[...])                                        # (nq, HW, C)

    # Prototypes: mean over the shot images of each class and over space.
    s_img = jnp.mean(fs, axis=1)                                     # (way*shot, C)

    # Query norms, clamped like F.cosine_similarity's per-norm eps=1e-8.
    qn = jnp.maximum(jnp.sqrt(jnp.sum(fq * fq, axis=2, keepdims=True)), 1e-8)

    # Per-way cosine logits; `way` is a small static int -> unrolled VPU work,
    # no degenerate MXU matmuls and no in-kernel reshapes/transposes.
    logit_cols = []
    for wi in range(way):
        sw = s_img[wi * shot:(wi + 1) * shot, :]                     # (shot, C)
        if shot > 1:
            sw = jnp.mean(sw, axis=0, keepdims=True)                 # (1, C)
        swn = jnp.maximum(jnp.sqrt(jnp.sum(sw * sw, axis=1, keepdims=True)),
                          1e-8)                                      # (1, 1)
        dots = jnp.sum(fq * sw, axis=2, keepdims=True)               # (nq, HW, 1)
        logit_cols.append(10.0 * dots / (qn * swn))                  # scale = 10

    # Softmax over ways per spatial position, then mean over positions.
    m = logit_cols[0]
    for l in logit_cols[1:]:
        m = jnp.maximum(m, l)
    es = [jnp.exp(l - m) for l in logit_cols]
    denom = es[0]
    for e in es[1:]:
        denom = denom + e
    inv = pl.reciprocal(denom, approx=True)                          # (nq, HW, 1)
    cols = [jnp.mean(e * inv, axis=1) for e in es]                   # each (nq, 1)
    o_ref[...] = jnp.concatenate(cols, axis=1)                       # (nq, way)


def attention_stage(x, w, b, *, way, shot):
    """Attention.forward for one stage as a single Pallas kernel (the whole
    stage activation slab fits trivially in VMEM)."""
    N, H, W, C = x.shape
    hw = H * W
    per = N // way
    nq = way * (per - shot)
    xr = x.reshape(way, per, hw, C)
    xs = xr[:, :shot].reshape(way * shot, hw, C)
    xq = xr[:, shot:].reshape(nq, hw, C)
    return pl.pallas_call(
        functools.partial(_atten_kernel, way=way, shot=shot),
        out_shape=jax.ShapeDtypeStruct((nq, way), jnp.float32),
    )(xs, xq, w.reshape(1, 1, C), b.reshape(1, 1, 1))


# ----------------------------- JAX glue layers ------------------------------

def conv2d(x, w, stride, padding):
    """NHWC cross-correlation (no bias) via bf16 im2col + Pallas MXU GEMM.
    Returns (out NHWC f32, per-channel sum, per-channel sum-of-squares) with
    the statistics computed inside the GEMM epilogue for the following BN."""
    N, H, W, C = x.shape
    O, Ci, KH, KW = w.shape
    assert Ci == C
    patches = lax.conv_general_dilated_patches(
        x.astype(jnp.bfloat16), (KH, KW), (stride, stride),
        [(padding, padding), (padding, padding)],
        dimension_numbers=('NHWC', 'HWIO', 'NHWC'))
    _, Ho, Wo, CK = patches.shape                 # CK = C*KH*KW (C slowest)
    assert CK == C * KH * KW
    A = patches.reshape(N * Ho * Wo, CK)          # no transpose in NHWC
    B = jnp.transpose(w.reshape(O, CK))           # (CK, O), tiny
    out, ssum, ssq = matmul_bn(A, B)              # (N*Ho*Wo, O) f32
    return out.reshape(N, Ho, Wo, O), ssum, ssq


def batchnorm(x, ssum, ssq, gamma, beta, eps=1e-5):
    # TODO(synk): train-mode BatchNorm2d batch statistics; running stats never
    # updated.  mean/var come from the GEMM epilogue, so only this single
    # fused elementwise pass over x remains in XLA.
    count = x.shape[0] * x.shape[1] * x.shape[2]
    mean = ssum / count
    var = jnp.maximum(ssq / count - mean * mean, 0.0)
    scale = gamma * lax.rsqrt(var + eps)
    return x * scale + (beta - mean * scale)      # NHWC: broadcast over C (lanes)


def maxpool_3x3_s2_p1(x):
    return lax.reduce_window(x, -jnp.inf, lax.max,
                             (1, 3, 3, 1), (1, 2, 2, 1),
                             [(0, 0), (1, 1), (1, 1), (0, 0)])


def simple_block(x, p, half_res):
    stride = 2 if half_res else 1
    out, ss, sq = conv2d(x, p['c1_w'], stride=stride, padding=1)
    out = jax.nn.relu(batchnorm(out, ss, sq, p['bn1_g'], p['bn1_b']))
    out, ss, sq = conv2d(out, p['c2_w'], stride=1, padding=1)
    out = batchnorm(out, ss, sq, p['bn2_g'], p['bn2_b'])
    if 'sc_w' in p:
        short, ss, sq = conv2d(x, p['sc_w'], stride=stride, padding=0)
        short = batchnorm(short, ss, sq, p['scbn_g'], p['scbn_b'])
    else:
        short = x
    return jax.nn.relu(out + short)


# ----------------------------- parameter init ------------------------------

def init_params(key, num_layers=(1, 1, 1, 1), out_dims=(8, 16, 16, 32)):
    keys = iter(jax.random.split(key, 128))

    def he_conv(k, o, i, kh, kw):
        n = kh * kw * o
        return (jax.random.normal(k, (o, i, kh, kw), jnp.float32)
                * math.sqrt(2.0 / float(n)))

    params = {
        'conv1_w': he_conv(next(keys), 64, 3, 7, 7),
        'bn1_g': jnp.ones((64,), jnp.float32),
        'bn1_b': jnp.zeros((64,), jnp.float32),
    }
    indim = 64
    stages = []
    for si, (nl, od) in enumerate(zip(num_layers, out_dims)):
        blocks = []
        for j in range(nl):
            half_res = (j == 0) and (si in (1, 2))
            blk = {'c1_w': he_conv(next(keys), od, indim, 3, 3),
                   'bn1_g': jnp.ones((od,), jnp.float32),
                   'bn1_b': jnp.zeros((od,), jnp.float32),
                   'c2_w': he_conv(next(keys), od, od, 3, 3),
                   'bn2_g': jnp.ones((od,), jnp.float32),
                   'bn2_b': jnp.zeros((od,), jnp.float32)}
            if (indim != od) or half_res:
                blk['sc_w'] = he_conv(next(keys), od, indim, 1, 1)
                blk['scbn_g'] = jnp.ones((od,), jnp.float32)
                blk['scbn_b'] = jnp.zeros((od,), jnp.float32)
            blocks.append(blk)
            indim = od
        stages.append(blocks)
    params['stages'] = stages

    attens = []
    for od in out_dims:
        bound = 1.0 / math.sqrt(od)
        attens.append({
            'w': jax.random.uniform(next(keys), (1, od, 1, 1), jnp.float32,
                                    minval=-bound, maxval=bound),
            'b': jax.random.uniform(next(keys), (1,), jnp.float32,
                                    minval=-bound, maxval=bound),
        })
    params['attens'] = attens
    params['coefficient'] = jnp.full((4,), 0.25, jnp.float32)
    return params


# ------------------------------- forward -----------------------------------

def atten_net_forward(params, x, *, way, shot):
    # NCHW only at the network boundary; everything internal is NHWC.
    out = jnp.transpose(x, (0, 2, 3, 1))

    # trunk: conv7x7 s2 -> BN -> ReLU -> maxpool3x3 s2
    out, ss, sq = conv2d(out, params['conv1_w'], stride=2, padding=3)
    out = jax.nn.relu(batchnorm(out, ss, sq, params['bn1_g'], params['bn1_b']))
    out = maxpool_3x3_s2_p1(out)

    ps = []
    for si, blocks in enumerate(params['stages']):
        for j, blk in enumerate(blocks):
            half_res = (j == 0) and (si in (1, 2))
            out = simple_block(out, blk, half_res)
        a = params['attens'][si]
        ps.append(attention_stage(out, a['w'], a['b'], way=way, shot=shot))

    # combine: weighted sum over the four stage predictions + softmax over ways
    # (tiny (nq, way) op -> plain jnp inside the jit).
    coef = params['coefficient']
    logits = sum(coef[i] * ps[i] for i in range(4))
    return jax.nn.softmax(logits, axis=1)


# --------------------------------- main -------------------------------------

if __name__ == "__main__":
    way, shot, n_query = 2, 1, 1
    key = jax.random.PRNGKey(0)
    kp, kx, kc1, kc2 = jax.random.split(key, 4)

    params = init_params(kp, num_layers=(1, 1, 1, 1), out_dims=(8, 16, 16, 32))

    # sanity check: NHWC im2col + Pallas bf16 GEMM conv matches the XLA conv
    # computed with the same bf16 operand precision (f32 accumulation).
    xc = jax.random.normal(kc1, (2, 9, 9, 3), jnp.float32)      # NHWC
    wc = jax.random.normal(kc2, (5, 3, 3, 3), jnp.float32)      # OIHW
    ref = lax.conv_general_dilated(
        xc.astype(jnp.bfloat16),
        jnp.transpose(wc, (2, 3, 1, 0)).astype(jnp.bfloat16),   # OIHW -> HWIO
        (2, 2), [(1, 1), (1, 1)],
        dimension_numbers=('NHWC', 'HWIO', 'NHWC'),
        preferred_element_type=jnp.float32)
    got, _, _ = conv2d(xc, wc, stride=2, padding=1)
    assert jnp.allclose(ref, got, atol=1e-2, rtol=1e-2), "conv sanity check failed"

    # episode batch layout: [class0_shot, class0_query, class1_shot, class1_query]
    x = jax.random.normal(kx, (way * (shot + n_query), 3, 32, 32), jnp.float32)

    fwd = jax.jit(functools.partial(atten_net_forward, way=way, shot=shot))
    p = jax.block_until_ready(fwd(params, x))

    assert p.shape == (way * n_query, way)
    assert bool(jnp.all(jnp.isfinite(p)))
    print("KERNEL_OK")
</pallas_src>

<mosaic_0001>
module attributes {stable_mosaic.version = 11 : i64} {
  func.func @_matmul_bn_kernel(%arg0: i32, %arg1: memref<50x27xbf16, #tpu.memory_space<vmem>>, %arg2: memref<27x128xbf16, #tpu.memory_space<vmem>>, %arg3: memref<50x128xf32, #tpu.memory_space<vmem>>, %arg4: memref<1x1x128xf32, #tpu.memory_space<vmem>>, %arg5: memref<1x1x128xf32, #tpu.memory_space<vmem>>) attributes {dimension_semantics = [#tpu.dimension_semantics<parallel>], iteration_bounds = array<i64: 1>, scalar_prefetch = 0 : i64, scratch_operands = 0 : i64, tpu.core_type = #tpu.core_type<tc>, window_params = [{transform_indices = @transform_0, window_bounds = array<i64: 50, 27>}, {pipeline_mode = #tpu.pipeline_mode<synchronous>, transform_indices = @transform_1, window_bounds = array<i64: 27, 128>}, {transform_indices = @transform_2, window_bounds = array<i64: 50, 128>}, {transform_indices = @transform_3, window_bounds = array<i64: 1, 1, 128>}, {transform_indices = @transform_4, window_bounds = array<i64: 1, 1, 128>}]} {
    %c0 = arith.constant 0 : index
    %c0_0 = arith.constant 0 : index
    %0 = vector.load %arg1[%c0, %c0_0] : memref<50x27xbf16, #tpu.memory_space<vmem>>, vector<50x27xbf16>
    %c0_1 = arith.constant 0 : index
    %c0_2 = arith.constant 0 : index
    %1 = vector.load %arg2[%c0_1, %c0_2] : memref<27x128xbf16, #tpu.memory_space<vmem>>, vector<27x128xbf16>
    %cst = arith.constant dense<0.000000e+00> : vector<50x128xf32>
    %2 = tpu.matmul %0, %1, %cst {dimension_numbers = #tpu.dot_dimension_numbers<[1], [0], [0], [1], [0, 0, 1, 1], [], []>} : vector<50x27xbf16>, vector<27x128xbf16>, vector<50x128xf32> -> vector<50x128xf32>
    %c0_3 = arith.constant 0 : index
    %c0_4 = arith.constant 0 : index
    %3 = vector.load %arg3[%c0_3, %c0_4] : memref<50x128xf32, #tpu.memory_space<vmem>>, vector<50x128xf32>
    tpu.vector_store %arg3[%c0_3, %c0_4], %2 {strides = array<i32>} : memref<50x128xf32, #tpu.memory_space<vmem>>, vector<50x128xf32>,
    %cst_5 = arith.constant dense<0.000000e+00> : vector<128xf32>
    %4 = vector.multi_reduction <add>, %2, %cst_5 [0] : vector<50x128xf32> to vector<128xf32>
    %5 = vector.shape_cast %4 : vector<128xf32> to vector<1x128xf32>
    %6 = vector.shape_cast %5 : vector<1x128xf32> to vector<1x1x128xf32>
    %c0_6 = arith.constant 0 : index
    %c0_7 = arith.constant 0 : index
    %c0_8 = arith.constant 0 : index
    %7 = vector.load %arg4[%c0_6, %c0_7, %c0_8] : memref<1x1x128xf32, #tpu.memory_space<vmem>>, vector<1x1x128xf32>
    tpu.vector_store %arg4[%c0_6, %c0_7, %c0_8], %6 {strides = array<i32>} : memref<1x1x128xf32, #tpu.memory_space<vmem>>, vector<1x1x128xf32>,
    %8 = arith.mulf %2, %2 : vector<50x128xf32>
    %cst_9 = arith.constant dense<0.000000e+00> : vector<128xf32>
    %9 = vector.multi_reduction <add>, %8, %cst_9 [0] : vector<50x128xf32> to vector<128xf32>
    %10 = vector.shape_cast %9 : vector<128xf32> to vector<1x128xf32>
    %11 = vector.shape_cast %10 : vector<1x128xf32> to vector<1x1x128xf32>
    %c0_10 = arith.constant 0 : index
    %c0_11 = arith.constant 0 : index
    %c0_12 = arith.constant 0 : index
    %12 = vector.load %arg5[%c0_10, %c0_11, %c0_12] : memref<1x1x128xf32, #tpu.memory_space<vmem>>, vector<1x1x128xf32>
    tpu.vector_store %arg5[%c0_10, %c0_11, %c0_12], %11 {strides = array<i32>} : memref<1x1x128xf32, #tpu.memory_space<vmem>>, vector<1x1x128xf32>,
    return
  }
  func.func @transform_0(%arg0: i32) -> (i32, i32) {
    %c0_i32 = arith.constant 0 : i32
    %c0_i32_0 = arith.constant 0 : i32
    return %arg0, %c0_i32 : i32, i32
  }
  func.func @transform_1(%arg0: i32) -> (i32, i32) {
    %c0_i32 = arith.constant 0 : i32
    %c0_i32_0 = arith.constant 0 : i32
    %c0_i32_1 = arith.constant 0 : i32
    return %c0_i32, %c0_i32_0 : i32, i32
  }
  func.func @transform_2(%arg0: i32) -> (i32, i32) {
    %c0_i32 = arith.constant 0 : i32
    %c0_i32_0 = arith.constant 0 : i32
    return %arg0, %c0_i32 : i32, i32
  }
  func.func @transform_3(%arg0: i32) -> (i32, i32, i32) {
    %c0_i32 = arith.constant 0 : i32
    %c0_i32_0 = arith.constant 0 : i32
    %c0_i32_1 = arith.constant 0 : i32
    return %arg0, %c0_i32, %c0_i32_0 : i32, i32, i32
  }
  func.func @transform_4(%arg0: i32) -> (i32, i32, i32) {
    %c0_i32 = arith.constant 0 : i32
    %c0_i32_0 = arith.constant 0 : i32
    %c0_i32_1 = arith.constant 0 : i32
    return %arg0, %c0_i32, %c0_i32_0 : i32, i32, i32
  }
}

</mosaic_0001>

<bundles_post_ra>
// kernel: tpu_custom_call.1
= control target key start
LH: loop header
LB: loop body
LE: loop exit
PB: predicated region body
PF: predicated region fallthrough
CT: control target
= control target key end

     0   :  { %10 = vsyncpa [#allocation3], 0  ;;  %vm70_vm0 = vcmask 1044480   ;;  %vm71_vm1 = vcmask 1045504   ;;  %v341_v2 = vmov 65535   ;;  %vm57_vm2 = vcmask 220160   ;;  %s441_s0 = inlined_call_operand.vmem [shape: bf16[50,27], index: 0, kind: input, shape index: {}]   ;;  %s442_s1 = inlined_call_operand.vmem [shape: bf16[27,128], index: 1, kind: input, shape index: {}]   ;;  %s443_s2 = inlined_call_operand.hbm [shape: f32[50,128], index: 2, kind: output, shape index: {0}]   ;;  %s444_s3 = inlined_call_operand.hbm [shape: f32[1,1,128], index: 3, kind: output, shape index: {1}]   ;;  %s445_s4 = inlined_call_operand.hbm [shape: f32[1,1,128], index: 4, kind: output, shape index: {2}]  }
   0x1   :  { %v265_v0 = vld [vmem:[%s442_s1] sm:$0xff]   ;;  %v266_v1 = vld [vmem:[%s442_s1 + $0x8] sm:$0x3f]   ;;  %v72_v3 = vsel %vm70_vm0, 4294967295, %v341_v2  ;;  %v269_v6 = vld [vmem:[%s441_s0 + $0x10] sm:$0xff]  }
   0x2   :  { %243 = vmatprep.subr.bf16.mxu0 %v265_v0  ;;  %255 = vmatprep.subr.bf16.mxu1 %v265_v0  ;;  %v267_v4 = vld [vmem:[%s441_s0] sm:$0xff]   ;;  %v73_v5 = vsel %vm71_vm1, %v72_v3, 0 }
   0x3   :  { %244 = vmatpush3.bf16.msra.mxu0 %v265_v0  ;;  %257 = vmatpush3.bf16.msra.mxu1 %v265_v0  ;;  %v75_v7 = vand.u32 %v266_v1, %v73_v5 }
   0x4   :  { %247 = vmatprep.mubr.msk.bf16.mxu0 %vm57_vm2, %v267_v4 }
   0x5   :  { %11 = vsyncpa [#allocation5], 0  ;;  %251 = vmatprep.mubr.msk.bf16.mxu1 %vm57_vm2, %v269_v6  ;;  %245 = vmatprep.subr.bf16.mxu0 %v75_v7  ;;  %v268_v8 = vld [vmem:[%s441_s0 + $0x8] sm:$0xff]   ;;  %v270_v9 = vld [vmem:[%s441_s0 + $0x18] ss:$0 sps:$4 sm:$0x11]  }
   0x6   :  { %256 = vmatprep.subr.bf16.mxu1 %v75_v7  ;;  %s342_s26 = smov [#allocation2]  }
   0x7   :  { %246 = vmatpush3.bf16.msra.mxu0 %v75_v7  ;;  %258 = vmatpush3.bf16.msra.mxu1 %v75_v7  ;;  %s189_s27 = sshll.u32 %s342_s26, 4  ;;  %s390_s27 = int_to_ptr.vmem [resolvable:$true] %s189_s27 }
   0x8   :  { %s271_s0 = scalar_lea.vmem %s390_s27, 896  ;;  %p276_p1 = scmp.lt.s32.totalorder %s390_s27, %s390_s27 }
   0x9   :  { %p272_p0 = scmp.ne.s32.totalorder %s390_s27, %s271_s0  ;;  %p277_p2 = scmp.lt.s32.totalorder %s271_s0, %s271_s0 }
   0xa   :  { %248 = vmatmul.mubr.msk.bf16.vlgmr.msra.gmra.mrb[0].mxu0 %vm57_vm2, %v268_v8  ;;  %252 = vmatmul.mubr.msk.bf16.vlgmr.msra.gmra.mrb[0].mxu1 %vm57_vm2, %v270_v9 }
   0xb   :  { %p278_p3 = por %p277_p2, %p276_p1 }
   0xd   :  { %p279_p4 = pnand %p278_p3, %p272_p0 }
  0xdd   :  { %v249_v10 = vpop.f32.mrb[0].mxu0  ;;  %v253_v11 = vpop.f32.mrb[0].mxu1 }
  0xde   :  { %143 = vst [vmem:[#allocation2 + $0x10] sm:$0xff] %v249_v10  ;;  %v111_v12 = vpop.f32.mrb[1].mxu0  ;;  %147 = vst [vmem:[#allocation2 + $0x30] sm:$0x3] %v253_v11  ;;  %v127_v13 = vpop.f32.mrb[1].mxu1 }
  0xdf   :  { %141 = vst [vmem:[#allocation2] sm:$0xff] %v111_v12  ;;  %v250_v14 = vpop.f32.mrb[2].mxu0  ;;  %145 = vst [vmem:[#allocation2 + $0x20] sm:$0xff] %v127_v13  ;;  %v254_v15 = vpop.f32.mrb[2].mxu1  ;;  %v163_v18 = vmul.f32 %v111_v12, %v111_v12 }
  0xe0   :  { %144 = vst [vmem:[#allocation2 + $0x18] sm:$0xff] %v250_v14  ;;  %v114_v16 = vpop.f32.mrb[3].mxu0  ;;  %v130_v17 = vpop.f32.mrb[3].mxu1 }
  0xe1   :  { %142 = vst [vmem:[#allocation2 + $0x8] sm:$0xff] %v114_v16  ;;  %v148_v19 = vadd.f32 %v114_v16, %v111_v12  ;;  %v164_v20 = vmul.f32 %v114_v16, %v114_v16  ;;  %146 = vst [vmem:[#allocation2 + $0x28] sm:$0xff] %v130_v17 }
  0xe2   :  { %282 = shalt.err (!%p279_p4)
}
  0xe3   :  { %s283_s30 = scalar_lea.hbm %s443_s2, 896 }
  0xe4   :  { %p284_p5 = scmp.ne.s32.totalorder %s443_s2, %s283_s30  ;;  %p287_p6 = scmp.lt.u32.totalorder %s283_s30, %s443_s2 }
  0xe6   :  { %p289_p7 = pnand %p287_p6, %p284_p5 }
  0xe8   :  { %292 = shalt.err (!%p289_p7)
}
  0xe9   :  { %s343_s9 = smov 128   ;;  %s344_s10 = smov 8   ;;  %v165_v21 = vmul.f32 %v249_v10, %v249_v10  ;;  %v149_v22 = vadd.f32 %v249_v10, %v148_v19  ;;  %v170_v23 = vadd.f32 %v164_v20, %v163_v18  ;;  %v166_v24 = vmul.f32 %v250_v14, %v250_v14 }
  0xea   :  { %195 = dma.vmem_to_hbm [thread:$0]  %s390_s27, 896, %s443_s2, [#allocation3], %s343_s9, %s343_s9, %s344_s10   ;;  %v167_v27 = vmul.f32 %v127_v13, %v127_v13  ;;  %vm153_vm3 = vcmask 1041408   ;;  %v169_v30 = vmul.f32 %v253_v11, %v253_v11  ;;  %v168_v33 = vmul.f32 %v130_v17, %v130_v17 }
  0xeb   :  { %v171_v25 = vadd.f32 %v170_v23, %v165_v21  ;;  %v150_v26 = vadd.f32 %v250_v14, %v149_v22  ;;  %v154_v34 = vsel %vm153_vm3, %v253_v11, 0.0  ;;  %s345_s2 = smov [#allocation4]   ;;  %s346_s14 = smov [#allocation6]  }
  0xec   :  { %v175_v37 = vsel %vm153_vm3, %v169_v30, 0.0  ;;  %s202_s13 = sshll.u32 %s345_s2, 4  ;;  %s212_s15 = sshll.u32 %s346_s14, 4  ;;  %s203_s13 = int_to_ptr.vmem [resolvable:$true] %s202_s13  ;;  %s409_s15 = int_to_ptr.vmem [resolvable:$true] %s212_s15 }
  0xed   :  { %v151_v28 = vadd.f32 %v150_v26, %v127_v13  ;;  %v172_v29 = vadd.f32 %v171_v25, %v166_v24  ;;  %s293_s16 = scalar_lea.vmem %s203_s13, 16  ;;  %s297_s17 = scalar_lea.vmem %s203_s13, 32 }
  0xee   :  { %p294_p8 = scmp.ne.s32.totalorder %s203_s13, %s293_s16  ;;  %p298_p9 = scmp.lt.s32.totalorder %s203_s13, %s203_s13 }
  0xef   :  { %v173_v31 = vadd.f32 %v172_v29, %v167_v27  ;;  %v152_v32 = vadd.f32 %v151_v28, %v130_v17  ;;  %p299_p10 = scmp.lt.s32.totalorder %s297_s17, %s293_s16 }
  0xf1   :  { %v155_v35 = vadd.f32 %v154_v34, %v152_v32  ;;  %v174_v36 = vadd.f32 %v173_v31, %v168_v33  ;;  %p300_p11 = por %p299_p10, %p298_p9 }
  0xf3   :  { %v156_v38 = vrot.slane %v155_v35, 4  ;;  %v176_v39 = vadd.f32 %v175_v37, %v174_v36  ;;  %p301_p12 = pnand %p300_p11, %p294_p8 }
  0xf5   :  { %v157_v40 = vadd.f32 %v156_v38, %v155_v35  ;;  %v177_v41 = vrot.slane %v176_v39, 4 }
  0xf7   :  { %v158_v42 = vrot.slane %v157_v40, 2  ;;  %v178_v43 = vadd.f32 %v177_v41, %v176_v39 }
  0xf9   :  { %v159_v44 = vadd.f32 %v158_v42, %v157_v40  ;;  %v179_v45 = vrot.slane %v178_v43, 2 }
  0xfb   :  { %v160_v46 = vrot.slane %v159_v44, 1  ;;  %v180_v47 = vadd.f32 %v179_v45, %v178_v43 }
  0xfd   :  { %v161_v48 = vadd.f32 %v160_v46, %v159_v44  ;;  %v181_v49 = vrot.slane %v180_v47, 1 }
  0xff   :  { %162 = vst [vmem:[#allocation4] sm:$0x1] %v161_v48  ;;  %v182_v50 = vadd.f32 %v181_v49, %v180_v47 }
 0x100   :  { %304 = shalt.err (!%p301_p12)
}
 0x101   :  { %s305_s20 = scalar_lea.hbm %s444_s3, 16 }
 0x102   :  { %p306_p13 = scmp.ne.s32.totalorder %s444_s3, %s305_s20  ;;  %p309_p0 = scmp.lt.u32.totalorder %s305_s20, %s444_s3 }
 0x104   :  { %p311_p1 = pnand %p309_p0, %p306_p13 }
 0x106   :  { %314 = shalt.err (!%p311_p1)
}
 0x107   :  { %205 = dma.vmem_to_hbm [thread:$0]  %s203_s13, 16, %s444_s3, [#allocation5]   ;;  %183 = vst [vmem:[#allocation6] sm:$0x1] %v182_v50 }
 0x108   :  { %s315_s26 = scalar_lea.vmem %s409_s15, 16  ;;  %s319_s27 = scalar_lea.vmem %s409_s15, 32 }
 0x109   :  { %p316_p2 = scmp.ne.s32.totalorder %s409_s15, %s315_s26  ;;  %p320_p3 = scmp.lt.s32.totalorder %s409_s15, %s409_s15 }
 0x10a   :  { %p321_p4 = scmp.lt.s32.totalorder %s319_s27, %s315_s26 }
 0x10c   :  { %p322_p5 = por %p321_p4, %p320_p3 }
 0x10e   :  { %p323_p6 = pnand %p322_p5, %p316_p2 }
 0x110   :  { %326 = shalt.err (!%p323_p6)
}
 0x111   :  { %s327_s29 = scalar_lea.hbm %s445_s4, 16 }
 0x112   :  { %p328_p7 = scmp.ne.s32.totalorder %s445_s4, %s327_s29  ;;  %p331_p8 = scmp.lt.u32.totalorder %s327_s29, %s445_s4 }
 0x114   :  { %p333_p9 = pnand %p331_p8, %p328_p7 }
 0x116   :  { %336 = shalt.err (!%p333_p9)
}
 0x117   :  { %215 = dma.vmem_to_hbm [thread:$0]  %s409_s15, 16, %s445_s4, [#allocation5]  }
 0x118   :  { %337 = dma.done.wait [#allocation3], 896  }
 0x119   :  { %338 = vsyncadd [#allocation3], 4294966400 }
 0x11a   :  { %339 = dma.done.wait [#allocation5], 32  }
 0x11b   :  { %340 = vsyncadd [#allocation5], 4294967264 }
 0x11c   :  { %225 = vsyncpa [#allocation3], 1 }
 0x11d   :  { %226 = vsyncpa [#allocation5], 1 }

</bundles_post_ra>
